<compile_context>
chip_gen: v6e
topology: v6e:2x2x1
jax: 0.10.0
libtpu: 0.0.40
codegen_flags: <defaults>
</compile_context>

<pallas_src>
import functools

import jax
import jax.numpy as jnp
from jax.experimental import pallas as pl
from jax.experimental.pallas import tpu as pltpu


def _gemm_bn_relu_kernel(cols_ref, w_ref, scale_ref, shift_ref, o_ref, *, relu):
    # (c_out, K) @ (K, tile_m) -> (c_out, tile_m), f32 accumulation on the MXU.
    acc = jnp.dot(w_ref[...], cols_ref[...], preferred_element_type=jnp.float32)
    y = acc * scale_ref[...] + shift_ref[...]          # folded BN (+ conv bias), f32
    if relu:
        y = jnp.maximum(y, 0.0)
    o_ref[...] = y.astype(o_ref.dtype)                 # lane-dense (last dim = tile_m)


def basic_conv_forward(x, weight, gamma, beta, running_mean, running_var, *,
                       stride=1, padding=0, eps=1e-5, relu=True, bn=True,
                       conv_bias=None, tile_m=256):
    """Fused Conv2d(+BN, inference stats)(+ReLU).

    x:      (N, C_in, H, W)  NCHW, f32 (PyTorch layout)
    weight: (C_out, C_in, KH, KW)
    gamma/beta/running_mean/running_var: (C_out,)
    Returns (N, C_out, H_out, W_out) NCHW.
    """
    assert stride == 1, "only stride=1 (module default) is implemented"
    n, c_in, h, w = x.shape
    c_out, c_in_w, kh, kw = weight.shape
    assert c_in_w == c_in, "groups != 1 not implemented"
    h_out = h + 2 * padding - kh + 1
    w_out = w + 2 * padding - kw + 1
    k_dim = c_in * kh * kw
    m_total = n * h_out * w_out

    # ---- Host-side im2col: K order = (c_in, kh, kw), M order = (n, h, w), M last.
    x_pad = jnp.pad(x, ((0, 0), (0, 0), (padding, padding), (padding, padding)))
    slices = [x_pad[:, :, i:i + h_out, j:j + w_out]          # (n, c_in, h_out, w_out)
              for i in range(kh) for j in range(kw)]
    patches = jnp.stack(slices, axis=0)                      # (kh*kw, n, c_in, h_out, w_out)
    cols = jnp.transpose(patches, (2, 0, 1, 3, 4)).reshape(k_dim, m_total)
    cols = cols.astype(jnp.bfloat16)                         # bf16 activations on the host

    # Pad M so the grid is a cdiv-exact multiple of tile_m (tile_m multiple of 128).
    tile_m = max(128, (tile_m // 128) * 128)
    m_pad = pl.cdiv(m_total, tile_m) * tile_m
    if m_pad != m_total:
        cols = jnp.pad(cols, ((0, 0), (0, m_pad - m_total)))

    # Weight as (c_out, K) bf16; K order (c_in, kh, kw) already matches cols.
    w2d = weight.reshape(c_out, k_dim).astype(jnp.bfloat16)

    # Fold BN (running stats) and conv bias into per-channel scale/shift (f32).
    if bn:
        scale = gamma / jnp.sqrt(running_var + eps)
        shift = beta - running_mean * scale
    else:
        scale = jnp.ones((c_out,), jnp.float32)
        shift = jnp.zeros((c_out,), jnp.float32)
    if conv_bias is not None:
        shift = shift + conv_bias * scale
    scale = scale.reshape(c_out, 1).astype(jnp.float32)
    shift = shift.reshape(c_out, 1).astype(jnp.float32)

    kernel = functools.partial(_gemm_bn_relu_kernel, relu=relu)
    grid = (m_pad // tile_m,)

    flops = 2 * m_pad * k_dim * c_out
    bytes_accessed = (cols.size * 2 + w2d.size * 2 + 2 * c_out * 4
                      + c_out * m_pad * 4)

    out2d = pl.pallas_call(
        kernel,
        out_shape=jax.ShapeDtypeStruct((c_out, m_pad), x.dtype),
        grid_spec=pltpu.PrefetchScalarGridSpec(
            num_scalar_prefetch=0,
            grid=grid,
            in_specs=[
                pl.BlockSpec((k_dim, tile_m), lambda i: (0, i)),   # im2col tile (bf16)
                pl.BlockSpec((c_out, k_dim), lambda i: (0, 0)),    # weights, resident
                pl.BlockSpec((c_out, 1), lambda i: (0, 0)),        # folded BN scale
                pl.BlockSpec((c_out, 1), lambda i: (0, 0)),        # folded BN shift
            ],
            out_specs=pl.BlockSpec((c_out, tile_m), lambda i: (0, i)),
        ),
        compiler_params=pltpu.CompilerParams(
            dimension_semantics=("parallel",),
            # Blocks are KB-scale; 32 MiB is comfortably within v5e/v6e (128 MiB)
            # and v7x (64 MiB) physical VMEM with double-buffering.
            vmem_limit_bytes=32 * 1024 * 1024,
        ),
        cost_estimate=pl.CostEstimate(flops=flops, transcendentals=0,
                                      bytes_accessed=bytes_accessed),
    )(cols, w2d, scale, shift)

    out2d = out2d[:, :m_total]                                # drop M padding
    out = out2d.reshape(c_out, n, h_out, w_out)
    return jnp.transpose(out, (1, 0, 2, 3))                   # back to NCHW


def reference_forward(x, weight, gamma, beta, mean, var, *,
                      padding=0, eps=1e-5, relu=True):
    """Plain-JAX reference (f32 everywhere) with the same math."""
    y = jax.lax.conv_general_dilated(
        x, weight, window_strides=(1, 1),
        padding=[(padding, padding), (padding, padding)],
        dimension_numbers=('NCHW', 'OIHW', 'NCHW'))
    scale = gamma / jnp.sqrt(var + eps)
    shift = beta - mean * scale
    y = y * scale[None, :, None, None] + shift[None, :, None, None]
    if relu:
        y = jnp.maximum(y, 0.0)
    return y


if __name__ == "__main__":
    # Small, deterministic example consistent with BasicConv:
    #   in_planes=4, out_planes=32, kernel_size=3, padding=1 (stride=1, bias=False)
    N, C_IN, H, W = 2, 4, 16, 16
    C_OUT, K, PAD = 32, 3, 1

    key = jax.random.PRNGKey(0)
    key, kx, kw, kg, kb, km, kv = jax.random.split(key, 7)

    x = jax.random.uniform(kx, (N, C_IN, H, W), dtype=jnp.float32)

    # Conv weight ~ kaiming_normal_ (std = sqrt(2 / fan_in)), no conv bias.
    fan_in = C_IN * K * K
    weight = (2.0 / fan_in) ** 0.5 * jax.random.normal(
        kw, (C_OUT, C_IN, K, K), dtype=jnp.float32)

    # Non-trivial BN parameters / running stats so the scale/shift is exercised.
    gamma = jax.random.uniform(kg, (C_OUT,), dtype=jnp.float32,
                               minval=0.5, maxval=1.5)
    beta = 0.1 * jax.random.normal(kb, (C_OUT,), dtype=jnp.float32)
    running_mean = 0.1 * jax.random.normal(km, (C_OUT,), dtype=jnp.float32)
    running_var = jax.random.uniform(kv, (C_OUT,), dtype=jnp.float32,
                                     minval=0.5, maxval=1.5)

    fwd = jax.jit(functools.partial(basic_conv_forward, stride=1, padding=PAD,
                                    relu=True, bn=True, tile_m=256))
    out = fwd(x, weight, gamma, beta, running_mean, running_var)
    out = jax.block_until_ready(out)

    ref = reference_forward(x, weight, gamma, beta, running_mean, running_var,
                            padding=PAD, relu=True)

    assert out.shape == (N, C_OUT, H, W), out.shape
    # bf16 MXU operands / bf16 host activations with f32 accumulation ->
    # loosened tolerance vs the f32 reference.
    assert jnp.allclose(out, ref, atol=5e-2, rtol=5e-2), \
        float(jnp.max(jnp.abs(out - ref)))

    print("KERNEL_OK")
</pallas_src>

<mosaic_0001>
module attributes {stable_mosaic.version = 11 : i64} {
  func.func @_gemm_bn_relu_kernel(%arg0: i32, %arg1: memref<36x256xbf16, #tpu.memory_space<vmem>>, %arg2: memref<32x36xbf16, #tpu.memory_space<vmem>>, %arg3: memref<32x1xf32, #tpu.memory_space<vmem>>, %arg4: memref<32x1xf32, #tpu.memory_space<vmem>>, %arg5: memref<32x256xf32, #tpu.memory_space<vmem>>) attributes {dimension_semantics = [#tpu.dimension_semantics<parallel>], iteration_bounds = array<i64: 2>, scalar_prefetch = 0 : i64, scratch_operands = 0 : i64, tpu.core_type = #tpu.core_type<tc>, window_params = [{transform_indices = @transform_0, window_bounds = array<i64: 36, 256>}, {pipeline_mode = #tpu.pipeline_mode<synchronous>, transform_indices = @transform_1, window_bounds = array<i64: 32, 36>}, {pipeline_mode = #tpu.pipeline_mode<synchronous>, transform_indices = @transform_2, window_bounds = array<i64: 32, 1>}, {pipeline_mode = #tpu.pipeline_mode<synchronous>, transform_indices = @transform_3, window_bounds = array<i64: 32, 1>}, {transform_indices = @transform_4, window_bounds = array<i64: 32, 256>}]} {
    %c0 = arith.constant 0 : index
    %c0_0 = arith.constant 0 : index
    %0 = vector.load %arg2[%c0, %c0_0] : memref<32x36xbf16, #tpu.memory_space<vmem>>, vector<32x36xbf16>
    %c0_1 = arith.constant 0 : index
    %c0_2 = arith.constant 0 : index
    %1 = vector.load %arg1[%c0_1, %c0_2] : memref<36x256xbf16, #tpu.memory_space<vmem>>, vector<36x256xbf16>
    %cst = arith.constant dense<0.000000e+00> : vector<32x256xf32>
    %2 = tpu.matmul %0, %1, %cst {dimension_numbers = #tpu.dot_dimension_numbers<[1], [0], [0], [1], [0, 0, 1, 1], [], []>} : vector<32x36xbf16>, vector<36x256xbf16>, vector<32x256xf32> -> vector<32x256xf32>
    %c0_3 = arith.constant 0 : index
    %c0_4 = arith.constant 0 : index
    %3 = vector.load %arg3[%c0_3, %c0_4] : memref<32x1xf32, #tpu.memory_space<vmem>>, vector<32x1xf32>
    %4 = vector.broadcast %3 : vector<32x1xf32> to vector<32x256xf32>
    %5 = arith.mulf %2, %4 : vector<32x256xf32>
    %c0_5 = arith.constant 0 : index
    %c0_6 = arith.constant 0 : index
    %6 = vector.load %arg4[%c0_5, %c0_6] : memref<32x1xf32, #tpu.memory_space<vmem>>, vector<32x1xf32>
    %7 = vector.broadcast %6 : vector<32x1xf32> to vector<32x256xf32>
    %8 = arith.addf %5, %7 : vector<32x256xf32>
    %cst_7 = arith.constant 0.000000e+00 : f32
    %9 = vector.broadcast %cst_7 : f32 to vector<32x256xf32>
    %10 = arith.maximumf %8, %9 : vector<32x256xf32>
    %c0_8 = arith.constant 0 : index
    %c0_9 = arith.constant 0 : index
    %11 = vector.load %arg5[%c0_8, %c0_9] : memref<32x256xf32, #tpu.memory_space<vmem>>, vector<32x256xf32>
    tpu.vector_store %arg5[%c0_8, %c0_9], %10 {strides = array<i32>} : memref<32x256xf32, #tpu.memory_space<vmem>>, vector<32x256xf32>,
    return
  }
  func.func @transform_0(%arg0: i32) -> (i32, i32) {
    %c0_i32 = arith.constant 0 : i32
    %c0_i32_0 = arith.constant 0 : i32
    return %c0_i32, %arg0 : i32, i32
  }
  func.func @transform_1(%arg0: i32) -> (i32, i32) {
    %c0_i32 = arith.constant 0 : i32
    %c0_i32_0 = arith.constant 0 : i32
    %c0_i32_1 = arith.constant 0 : i32
    return %c0_i32, %c0_i32_0 : i32, i32
  }
  func.func @transform_2(%arg0: i32) -> (i32, i32) {
    %c0_i32 = arith.constant 0 : i32
    %c0_i32_0 = arith.constant 0 : i32
    %c0_i32_1 = arith.constant 0 : i32
    return %c0_i32, %c0_i32_0 : i32, i32
  }
  func.func @transform_3(%arg0: i32) -> (i32, i32) {
    %c0_i32 = arith.constant 0 : i32
    %c0_i32_0 = arith.constant 0 : i32
    %c0_i32_1 = arith.constant 0 : i32
    return %c0_i32, %c0_i32_0 : i32, i32
  }
  func.func @transform_4(%arg0: i32) -> (i32, i32) {
    %c0_i32 = arith.constant 0 : i32
    %c0_i32_0 = arith.constant 0 : i32
    return %c0_i32, %arg0 : i32, i32
  }
}

</mosaic_0001>

<bundles_post_ra>
// kernel: basic_conv_forward.1
= control target key start
LH: loop header
LB: loop body
LE: loop exit
PB: predicated region body
PF: predicated region fallthrough
CT: control target
= control target key end

     0   :  { %s656_s15 = smov 0   ;;  %s658_s16 = smov 0   ;;  %s768_s0 = inlined_call_operand.vmem [shape: bf16[36,512], index: 0, kind: input, shape index: {}]   ;;  %s769_s1 = inlined_call_operand.vmem [shape: bf16[32,36], index: 1, kind: input, shape index: {}]   ;;  %s770_s2 = inlined_call_operand.vmem [shape: f32[32,1], index: 2, kind: input, shape index: {}]   ;;  %s771_s3 = inlined_call_operand.vmem [shape: f32[32,1], index: 3, kind: input, shape index: {}]   ;;  %s772_s4 = inlined_call_operand.vmem [shape: f32[32,512], index: 4, kind: output, shape index: {}]  }
   0x1   :  { %s660_s17 = smov 0  }
   0x2 LB: > { %s535_s18 = sadd.s32 4294967295, %s628_s17   ;;  %s673_s19 = sadd.s32 1, %s628_s17   ;;  %s628_s17 = sphi %s660_s17, %s776_s17   ;;  %s624_s16 = sphi %s658_s16, %s775_s16   ;;  %s620_s15 = sphi %s656_s15, %s774_s15  }
   0x3   : > { %s18_s20 = ssub.s32 %s628_s17, %s673_s19  ;;  %s21_s21 = sadd.s32 1, %s624_s16 }
   0x4   : > { %p19_p0 = scmp.eq.s32.totalorder %s18_s20, 0  ;;  %p28_p1 = scmp.ne.s32.totalorder %s624_s16, %s620_s15 }
   0x5   : > { %p29_p2 = scmp.eq.s32.totalorder %s628_s17, 0  ;;  %p121_p3 = scmp.eq.s32.totalorder %s535_s18, 1 }
   0x6   : > { %s684_s22 = scalar_select %p19_p0, %s624_s16, %s21_s21  }
   0x7   : > { %p30_p4 = por %p29_p2, %p28_p1  ;;  %p686_p5 = por %p121_p3, %p28_p1 }
   0x8   : > { %p538_p6 = scmp.ge.s32.totalorder %s628_s17, 2 }
   0xa   : > { %152 = sbr.rel (%p538_p6) target bundleno = 22 (0x16), region = 28 }
   0xf   : > { %155 = sbr.rel (!%p30_p4) target bundleno = 22 (0x16), region = 32  ;;  %s157_s24 = sand.u32 (%p30_p4), 1, %s624_s16  }
  0x10   : > { %s559_s25 = sshll.u32 (%p30_p4), %s628_s17, 3  ;;  %s567_s26 = smul.u32 (%p30_p4), 40, %s157_s24 }
  0x11   : > { %s162_s29 = scalar_lea.vmem (%p30_p4), %s768_s0, %s559_s25 }
  0x12   : > { %v199_v0 = vld [vmem:[%s162_s29] sm:$0xff] (%p30_p4)  ;;  %v201_v1 = vld [vmem:[%s162_s29 + $0x10] sm:$0xff] (%p30_p4)  ;;  %s159_s30 = scalar_lea.vmem (%p30_p4), [#allocation2], %s567_s26 }
  0x13   : > { %v203_v2 = vld [vmem:[%s162_s29 + $0x20] sm:$0xff] (%p30_p4)  ;;  %v205_v3 = vld [vmem:[%s162_s29 + $0x30] sm:$0xff] (%p30_p4)  ;;  %200 = vst [vmem:[%s159_s30] sm:$0xff] (%p30_p4), %v199_v0  ;;  %202 = vst [vmem:[%s159_s30 + $0x8] sm:$0xff] (%p30_p4), %v201_v1 }
  0x14   : > { %v207_v4 = vld [vmem:[%s162_s29 + $0x40] sm:$0xff]  ;;  %204 = vst [vmem:[%s159_s30 + $0x10] sm:$0xff] %v203_v2  ;;  %206 = vst [vmem:[%s159_s30 + $0x18] sm:$0xff] %v205_v3 }
  0x15   : > { %208 = vst [vmem:[%s159_s30 + $0x20] sm:$0xff] %v207_v4 }
  0x16 PF: > { %p541_p7 = scmp.ge.s32.totalorder %s628_s17, 1  ;;  %p213_p8 = scmp.lt.s32.totalorder %s628_s17, 3 }
  0x18   : > { %p214_p9 = pnand %p541_p7, %p213_p8 }
  0x19   : > { %s220_s5 = sand.u32 (!%p214_p9), 1, %s620_s15  }
  0x1a   : > { %217 = sbr.rel (%p214_p9) target bundleno = 262 (0x106), region = 70  ;;  %s542_s10 = sshll.u32 (!%p214_p9), %s220_s5, 6 }
  0x1b   : > { %s568_s6 = smul.u32 (!%p214_p9), 40, %s220_s5  ;;  %s733_s15 = scalar_lea.vmem (!%p214_p9), [#allocation3], %s542_s10 }
  0x1d   : > { %s222_s11 = scalar_lea.vmem (!%p214_p9), [#allocation2], %s568_s6 }
  0x1f   : > { %v630_v5 = vmov 0   ;;  %v360_v6 = vld [vmem:[%s770_s2 + $0x10] sm:$0xff]  ;;  %v358_v7 = vld [vmem:[%s770_s2] sm:$0xff]  ;;  %vm298_vm0 = vcmask 1041408   ;;  %v361_v13 = vld [vmem:[%s770_s2 + $0x18] sm:$0xff]  ;;  %vm291_vm1 = vcmask 293888  }
  0x20   : > { %337 = vmatprep.mubr.bf16.mxu0 %v630_v5  ;;  %347 = vmatprep.mubr.bf16.mxu1 %v630_v5  ;;  %v255_v8 = vld [vmem:[%s222_s11 + $0x20] sm:$0x33]  ;;  %v598_v11 = vld [vmem:[%s222_s11 + $0x14] ss:$8 sps:$4 sm:$0xff]   ;;  %v600_v15 = vld [vmem:[%s222_s11 + $0x10] ss:$8 sps:$4 sm:$0xff]  }
  0x21   : > { %595 = vset.pattern.permute.xlu1 %v630_v5  ;;  %594 = vset.pattern.permute.xlu0 %v630_v5  ;;  %v550_v9 = vcombine.high %v255_v8, %v255_v8  ;;  %v549_v10 = vcombine.low %v255_v8, %v255_v8  ;;  %v359_v14 = vld [vmem:[%s770_s2 + $0x8] sm:$0xff]  ;;  %v390_v18 = vld [vmem:[%s771_s3] sm:$0xff]  ;;  %v393_v22 = vld [vmem:[%s771_s3 + $0x18] sm:$0xff]  ;;  %s560_s5 = sshll.u32 (%p686_p5), %s535_s18, 4 }
  0x22   : > { %374 = vperm.xlu1 %595, %v360_v6   ;;  %364 = vperm.xlu0 %594, %v358_v7   ;;  %v601_v16 = vld [vmem:[%s222_s11 + $0x4] ss:$8 sps:$4 sm:$0xff]   ;;  %v603_v19 = vld [vmem:[%s222_s11] ss:$8 sps:$4 sm:$0xff]   ;;  %s447_s13 = scalar_lea.vmem (%p686_p5), %s772_s4, %s560_s5 }
  0x23   : > { %551 = vmatprep.subr.msk.bf16.mxu0 %vm298_vm0, %v550_v9  ;;  %561 = vmatprep.subr.msk.bf16.mxu1 %vm298_vm0, %v550_v9  ;;  %v300_v12 = vsel %vm298_vm0, %v549_v10, 0  ;;  %v391_v17 = vld [vmem:[%s771_s3 + $0x8] sm:$0xff]  ;;  %v604_v20 = vld [vmem:[%s769_s1] sm:$0xff]   ;;  %v392_v23 = vld [vmem:[%s771_s3 + $0x10] sm:$0xff] }
  0x24   : > { %316 = vmatpush1.bf16.msra.mxu0 %v300_v12  ;;  %564 = vmatpush1.bf16.msra.mxu1 %v300_v12  ;;  %v605_v21 = vld [vmem:[%s769_s1 + $0x8] sm:$0xff]  }
  0x25   : > { %317 = vmatprep.subr.bf16.mxu0 %v598_v11  ;;  %562 = vmatprep.subr.bf16.mxu1 %v598_v11 }
  0x26   : > { %379 = vperm.xlu1 %595, %v361_v13   ;;  %369 = vperm.xlu0 %594, %v359_v14  }
  0x28   : > { %318 = vmatpush1.bf16.msra.mxu0 %v600_v15  ;;  %565 = vmatpush1.bf16.msra.mxu1 %v600_v15 }
  0x29   : > { %319 = vmatprep.subr.bf16.mxu0 %v601_v16  ;;  %563 = vmatprep.subr.bf16.mxu1 %v601_v16 }
  0x2a   : > { %401 = vperm.xlu1 %595, %v391_v17   ;;  %396 = vperm.xlu0 %594, %v390_v18  }
  0x2c   : > { %320 = vmatpush1.bf16.msra.mxu0 %v603_v19  ;;  %566 = vmatpush1.bf16.msra.mxu1 %v603_v19 }
  0x2e   : > { %411 = vperm.xlu1 %595, %v393_v22   ;;  %406 = vperm.xlu0 %594, %v392_v23  }
  0x2f   : > { %552 = vmatmul.mubr.msk.bf16.vlgmr.msra.gmra.mxu0 %vm291_vm1, %v604_v20  ;;  %553 = vmatmul.mubr.msk.bf16.vlgmr.msra.gmra.mxu1 %vm291_vm1, %v605_v21 }
  0x9d   : > { %v365_v24 = vpop.permute.xlu0 %364  ;;  %v375_v25 = vpop.permute.xlu1 %374 }
  0xa1   : > { %v370_v26 = vpop.permute.xlu0 %369  ;;  %v380_v27 = vpop.permute.xlu1 %379 }
  0xa5   : > { %v397_v28 = vpop.permute.xlu0 %396  ;;  %v402_v31 = vpop.permute.xlu1 %401 }
  0xa9   : > { %v407_v32 = vpop.permute.xlu0 %406  ;;  %v412_v51 = vpop.permute.xlu1 %411 }
  0xef   : > { %v339_v29 = vpop.f32.mrf.mxu0  ;;  %v349_v30 = vpop.f32.mrf.mxu1 }
  0xf0   : > { %v382_v33 = vmul.f32 %v365_v24, %v339_v29  ;;  %v386_v34 = vmul.f32 %v375_v25, %v349_v30 }
  0xf1   : > { %v341_v35 = vpop.f32.mrf.mxu0  ;;  %v351_v36 = vpop.f32.mrf.mxu1 }
  0xf2   : > { %v414_v37 = vadd.f32 %v397_v28, %v382_v33  ;;  %v418_v38 = vadd.f32 %v407_v32, %v386_v34  ;;  %v383_v39 = vmul.f32 %v365_v24, %v341_v35  ;;  %v387_v40 = vmul.f32 %v375_v25, %v351_v36 }
  0xf3   : > { %v343_v41 = vpop.f32.mrf.mxu0  ;;  %v353_v42 = vpop.f32.mrf.mxu1 }
  0xf4   : > { %v422_v43 = vmax.f32 %v414_v37, 0.0  ;;  %v426_v44 = vmax.f32 %v418_v38, 0.0  ;;  %v415_v45 = vadd.f32 %v397_v28, %v383_v39  ;;  %v419_v46 = vadd.f32 %v407_v32, %v387_v40 }
  0xf5   : > { %v384_v47 = vmul.f32 %v370_v26, %v343_v41  ;;  %v388_v48 = vmul.f32 %v380_v27, %v353_v42  ;;  %v345_v49 = vpop.f32.mrf.mxu0  ;;  %v355_v50 = vpop.f32.mrf.mxu1 }
  0xf6   : > { %430 = vst [vmem:[%s733_s15] sm:$0xff] %v422_v43  ;;  %434 = vst [vmem:[%s733_s15 + $0x20] sm:$0xff] %v426_v44  ;;  %v423_v52 = vmax.f32 %v415_v45, 0.0  ;;  %v427_v53 = vmax.f32 %v419_v46, 0.0  ;;  %v385_v54 = vmul.f32 %v370_v26, %v345_v49  ;;  %v389_v55 = vmul.f32 %v380_v27, %v355_v50 }
  0xf7   : > { %v416_v56 = vadd.f32 %v402_v31, %v384_v47  ;;  %v420_v57 = vadd.f32 %v412_v51, %v388_v48 }
  0xf8   : > { %431 = vst [vmem:[%s733_s15 + $0x8] sm:$0xff] %v423_v52  ;;  %435 = vst [vmem:[%s733_s15 + $0x28] sm:$0xff] %v427_v53  ;;  %v417_v58 = vadd.f32 %v402_v31, %v385_v54  ;;  %v421_v59 = vadd.f32 %v412_v51, %v389_v55  ;;  %444 = sbr.rel (!%p686_p5) target bundleno = 262 (0x106), region = 78 }
  0xf9   : > { %v424_v60 = vmax.f32 %v416_v56, 0.0  ;;  %v428_v61 = vmax.f32 %v420_v57, 0.0 }
  0xfa   : > { %v425_v62 = vmax.f32 %v417_v58, 0.0  ;;  %v429_v63 = vmax.f32 %v421_v59, 0.0 }
  0xfb   : > { %432 = vst [vmem:[%s733_s15 + $0x10] sm:$0xff] %v424_v60  ;;  %436 = vst [vmem:[%s733_s15 + $0x30] sm:$0xff] %v428_v61 }
  0xfc   : > { %433 = vst [vmem:[%s733_s15 + $0x18] sm:$0xff] %v425_v62  ;;  %437 = vst [vmem:[%s733_s15 + $0x38] sm:$0xff] %v429_v63 }
  0xfd   : > { %v460_v0 = vld [vmem:[%s733_s15] sm:$0xff] }
  0xfe   : > { %v468_v4 = vld [vmem:[%s733_s15 + $0x20] sm:$0xff]  ;;  %461 = vst [vmem:[%s447_s13] sm:$0xff] %v460_v0 }
  0xff   : > { %v462_v1 = vld [vmem:[%s733_s15 + $0x8] sm:$0xff]  ;;  %469 = vst [vmem:[%s447_s13 + $0x40] sm:$0xff] %v468_v4 }
 0x100   : > { %v470_v5 = vld [vmem:[%s733_s15 + $0x28] sm:$0xff]  ;;  %463 = vst [vmem:[%s447_s13 + $0x8] sm:$0xff] %v462_v1 }
 0x101   : > { %471 = vst [vmem:[%s447_s13 + $0x48] sm:$0xff] %v470_v5 }
 0x102   : > { %v464_v2 = vld [vmem:[%s733_s15 + $0x10] sm:$0xff] }
 0x103   : > { %v466_v3 = vld [vmem:[%s733_s15 + $0x18] sm:$0xff]  ;;  %465 = vst [vmem:[%s447_s13 + $0x20] sm:$0xff] %v464_v2  ;;  %v472_v6 = vld [vmem:[%s733_s15 + $0x30] sm:$0xff] }
 0x104   : > { %467 = vst [vmem:[%s447_s13 + $0x28] sm:$0xff] %v466_v3  ;;  %v474_v7 = vld [vmem:[%s733_s15 + $0x38] sm:$0xff]  ;;  %473 = vst [vmem:[%s447_s13 + $0x60] sm:$0xff] %v472_v6 }
 0x105   : > { %475 = vst [vmem:[%s447_s13 + $0x68] sm:$0xff] %v474_v7 }
 0x106 PF: > { %p11_p10 = scmp.ge.s32.totalorder %s673_s19, 4   ;;  %s774_s15 = smov %s624_s16 }
 0x107   : > { %s775_s16 = smov %s684_s22  ;;  %s776_s17 = smov %s673_s19 }
 0x108   :  { %13 = sbr.rel (!%p11_p10) target bundleno = 2 (0x2), region = 132 }

</bundles_post_ra>
